<compile_context>
chip_gen: v5e
topology: v5e:2x2
jax: 0.10.0
libtpu: 0.0.40
codegen_flags: <defaults>
</compile_context>

<pallas_src>
import jax
import jax.numpy as jnp
from jax.experimental import pallas as pl
from jax.experimental.pallas import tpu as pltpu

# ------------------------- static config (small, synthetic) -----------------
HDC_WINDOW_SIZE = 3          # config.HDC_window_size
WORD_EMB_DIM    = 32         # config.word_embedding_dim
HDC_FILTER_NUM  = 16         # config.HDC_filter_num
MAX_TITLE_LEN   = 6          # config.max_title_length
SEQ_LEN         = MAX_TITLE_LEN + 2   # HDC_sequence_length
VOCAB_SIZE      = 50
CATEGORY_NUM    = 10
SUBCATEGORY_NUM = 20
LN_EPS          = 1e-5
MAX_TILE_BN     = 1024       # samples per grid step (fits VMEM on v5e/v6e/v7x)

SF = SEQ_LEN * HDC_FILTER_NUM      # 128  (lane-dense activation width)
SE = SEQ_LEN * WORD_EMB_DIM        # 256  (lane-dense input width)


# ------------------------------- Pallas kernel ------------------------------
def hdc_kernel(x_ref, w1_ref, w2_ref, w3_ref, vec_ref, out_ref):
    """x_ref: [tile, SE] bf16; w*_ref: folded conv matrices (bf16);
    vec_ref: [9, SF] f32 = [b1,g1,be1, b2,g2,be2, b3,g3,be3];
    out_ref: [tile, 3*SF] f32 (lane-dense)."""
    inv_n = 1.0 / SF

    def conv_ln_relu(x_bf16, w_ref, base):
        # One dilated Conv1d as a single MXU matmul (taps folded into K).
        y = jnp.dot(x_bf16, w_ref[...], preferred_element_type=jnp.float32)
        y = y + vec_ref[base:base + 1, :]                   # bias  [1,128]
        # Per-sample LayerNorm over the whole [F,S] slab == over the 128 lanes.
        # One-pass stats: independent sum / sum-of-squares reductions.
        s1 = jnp.sum(y, axis=1, keepdims=True)
        s2 = jnp.sum(y * y, axis=1, keepdims=True)
        mean = s1 * inv_n
        var = s2 * inv_n - mean * mean
        yn = (y - mean) * jax.lax.rsqrt(var + LN_EPS)       # rsqrt -> EUP
        return jnp.maximum(
            yn * vec_ref[base + 1:base + 2, :] + vec_ref[base + 2:base + 3, :],
            0.0)

    x0 = x_ref[...]                                         # [tile, SE] bf16
    d1 = conv_ln_relu(x0, w1_ref, 0)                        # [tile, 128] f32
    d2 = conv_ln_relu(d1.astype(jnp.bfloat16), w2_ref, 3)
    d3 = conv_ln_relu(d2.astype(jnp.bfloat16), w3_ref, 6)

    # Lane-dense, 128-aligned, unmasked stores.
    out_ref[:, 0 * SF:1 * SF] = d1
    out_ref[:, 1 * SF:2 * SF] = d2
    out_ref[:, 2 * SF:3 * SF] = d3


def _choose_tile(bn, max_tile=MAX_TILE_BN):
    # bf16 input rows pack 16 per sublane tile -> tile must be a multiple of 16.
    # Keep the grid even (and >=2 steps when bn allows) so v7x's two
    # TensorCores can split the "parallel" axis.
    steps = max(2, pl.cdiv(bn, max_tile))
    if steps % 2:
        steps += 1
    tile = max(16, 16 * pl.cdiv(pl.cdiv(bn, steps), 16))
    tile = min(tile, max_tile)
    grid = pl.cdiv(bn, tile)
    if grid > 1 and grid % 2:
        grid += 1
    return tile, grid


def hdc_pallas(x0_flat, params):
    """x0_flat: [BN, SE] f32 lane-dense d0.  Returns [BN, 3*SF] f32
    (columns = layer*SF + s*F + f)."""
    BN = x0_flat.shape[0]
    tile, grid = _choose_tile(BN)
    BN_pad = tile * grid

    x_bf = x0_flat.astype(jnp.bfloat16)
    if BN_pad != BN:
        x_bf = jnp.pad(x_bf, ((0, BN_pad - BN), (0, 0)))

    full = lambda i: (0, 0)
    out = pl.pallas_call(
        hdc_kernel,
        out_shape=jax.ShapeDtypeStruct((BN_pad, 3 * SF), jnp.float32),
        grid_spec=pltpu.PrefetchScalarGridSpec(
            num_scalar_prefetch=0,
            grid=(grid,),
            in_specs=[
                pl.BlockSpec((tile, SE), lambda i: (i, 0)),   # d0 slab (bf16)
                pl.BlockSpec((SE, SF), full),                 # conv1 matrix
                pl.BlockSpec((SF, SF), full),                 # conv2 matrix
                pl.BlockSpec((SF, SF), full),                 # conv3 matrix
                pl.BlockSpec((9, SF), full),                  # packed b/g/be
            ],
            out_specs=pl.BlockSpec((tile, 3 * SF), lambda i: (i, 0)),
        ),
        compiler_params=pltpu.CompilerParams(
            dimension_semantics=("parallel",)),
    )(x_bf, params["w1m"], params["w2m"], params["w3m"], params["vec"])
    return out[:BN]


# ------------------------------- JAX glue -----------------------------------
def hdc_forward(params, title_text, category, subCategory):
    """Replicates HDC.forward -> (d0, dL). Unused torch args (masks, entities,
    user_embedding) do not affect the computation and are omitted."""
    B, N, L = title_text.shape
    E, F = WORD_EMB_DIM, HDC_FILTER_NUM
    S = L + 2
    assert S == SEQ_LEN

    word = params["word_emb"][title_text]                  # [B, N, L, E]
    cat = params["cat_emb"][category][:, :, None, :]       # [B, N, 1, E]
    sub = params["sub_emb"][subCategory][:, :, None, :]    # [B, N, 1, E]
    d0_se = jnp.concatenate([cat, sub, word], axis=2)      # [B, N, S, E] seq-major
    d0 = jnp.transpose(d0_se, (0, 1, 3, 2))                # [B, N, E, S] (torch d0)

    # TODO(synk): fold the embedding gather into the kernel (scalar-prefetch
    # ids in SMEM + VMEM-resident tables) to avoid the x0 HBM round trip.
    x0_flat = d0_se.reshape(B * N, S * E)                  # lane-dense kernel input
    dL_flat = hdc_pallas(x0_flat, params)                  # [BN, 3*S*F]
    dL = dL_flat.reshape(B, N, 3, S, F)
    dL = jnp.transpose(dL, (0, 1, 2, 4, 3))                # [B, N, 3, F, S]
    return d0, dL


# --------------------------- pure-JAX reference ------------------------------
def _q(x):
    # Mirror the kernel's bf16 matmul-input quantization (f32 accumulation).
    return x.astype(jnp.bfloat16).astype(jnp.float32)


def _conv1d_ref(x, w_torch, b, dilation, padding):
    # x: [BN, C, S], w_torch: [F, C, W] (PyTorch layout)
    out = jax.lax.conv_general_dilated(
        x, w_torch, window_strides=(1,), padding=[(padding, padding)],
        rhs_dilation=(dilation,), dimension_numbers=("NCH", "OIH", "NCH"))
    return out + b[None, :, None]


def _ln_relu_ref(y, g, be):
    mean = y.mean(axis=(1, 2), keepdims=True)
    var = ((y - mean) ** 2).mean(axis=(1, 2), keepdims=True)
    return jnp.maximum((y - mean) / jnp.sqrt(var + LN_EPS) * g[None] + be[None], 0.0)


def hdc_reference(pt, d0_flat):
    pad0 = (HDC_WINDOW_SIZE - 1) // 2
    d1 = _ln_relu_ref(_conv1d_ref(_q(d0_flat), _q(pt["w1"]), pt["b1"], 1, pad0),
                      pt["g1"], pt["be1"])
    d2 = _ln_relu_ref(_conv1d_ref(_q(d1), _q(pt["w2"]), pt["b2"], 2, pad0 + 1),
                      pt["g2"], pt["be2"])
    d3 = _ln_relu_ref(_conv1d_ref(_q(d2), _q(pt["w3"]), pt["b3"], 3, pad0 + 2),
                      pt["g3"], pt["be3"])
    return jnp.stack([d1, d2, d3], axis=1)                 # [BN, 3, F, S]


# ----------------------------- param packing ---------------------------------
def build_conv_matrix(w_torch, dilation, padding, S=SEQ_LEN):
    """Fold a 3-tap dilated Conv1d (torch weight [F, C, W], zero 'same' padding)
    into a block-Toeplitz matrix M [S*C, S*F] with
    M[s_in*C + c, s_out*F + f] = w[f, c, k] iff s_in == s_out + k*dilation - padding."""
    F_, C, W_ = w_torch.shape
    M = jnp.zeros((S * C, S * F_), jnp.float32)
    for s_out in range(S):
        for k in range(W_):
            s_in = s_out + k * dilation - padding
            if 0 <= s_in < S:
                M = M.at[s_in * C:(s_in + 1) * C,
                         s_out * F_:(s_out + 1) * F_].add(w_torch[:, :, k].T)
    return M


def init_params(key):
    E, F, W, S = WORD_EMB_DIM, HDC_FILTER_NUM, HDC_WINDOW_SIZE, SEQ_LEN
    ks = jax.random.split(key, 16)

    # TODO(synk): word embeddings come from a pickle in the original module;
    # random init here (forward semantics are unchanged).
    word_emb = jax.random.normal(ks[0], (VOCAB_SIZE, E), jnp.float32) * 0.1
    cat_emb = jax.random.uniform(ks[1], (CATEGORY_NUM, E), jnp.float32, -0.1, 0.1)
    sub_emb = jax.random.uniform(ks[2], (SUBCATEGORY_NUM, E), jnp.float32, -0.1, 0.1)
    sub_emb = sub_emb.at[0].set(0.0)   # initialize(): zeros_(subCategory_embedding.weight[0])

    def conv_init(kw, kb, cin):
        bound = 1.0 / (cin * W) ** 0.5
        w = jax.random.uniform(kw, (F, cin, W), jnp.float32, -bound, bound)  # torch layout
        b = jax.random.uniform(kb, (F,), jnp.float32, -bound, bound)
        return w, b

    w1t, b1 = conv_init(ks[3], ks[4], E)
    w2t, b2 = conv_init(ks[5], ks[6], F)
    w3t, b3 = conv_init(ks[7], ks[8], F)

    def ln_init(kg, kb):   # slightly perturbed affine params to exercise packing
        g = 1.0 + 0.1 * jax.random.normal(kg, (F, S), jnp.float32)
        be = 0.1 * jax.random.normal(kb, (F, S), jnp.float32)
        return g, be

    g1t, be1t = ln_init(ks[9], ks[10])
    g2t, be2t = ln_init(ks[11], ks[12])
    g3t, be3t = ln_init(ks[13], ks[14])

    def pack_fs(a_fs):      # torch [F, S] -> lane-packed [1, S*F] (s-major, f-minor)
        return a_fs.T.reshape(1, S * F)

    def pack_bias(b):       # [F] -> [1, S*F]
        return jnp.broadcast_to(b, (S, F)).reshape(1, S * F)

    # All tiny per-layer vectors in one [9, 128] f32 array (one DMA / buffer).
    vec = jnp.concatenate([
        pack_bias(b1), pack_fs(g1t), pack_fs(be1t),
        pack_bias(b2), pack_fs(g2t), pack_fs(be2t),
        pack_bias(b3), pack_fs(g3t), pack_fs(be3t)], axis=0).astype(jnp.float32)

    params = dict(
        word_emb=word_emb, cat_emb=cat_emb, sub_emb=sub_emb,
        w1m=build_conv_matrix(w1t, 1, 1).astype(jnp.bfloat16),
        w2m=build_conv_matrix(w2t, 2, 2).astype(jnp.bfloat16),
        w3m=build_conv_matrix(w3t, 3, 3).astype(jnp.bfloat16),
        vec=vec,
    )
    params_torch = dict(
        w1=w1t, b1=b1, g1=g1t, be1=be1t,
        w2=w2t, b2=b2, g2=g2t, be2=be2t,
        w3=w3t, b3=b3, g3=g3t, be3=be3t,
    )
    return params, params_torch


# --------------------------------- main --------------------------------------
if __name__ == "__main__":
    key = jax.random.PRNGKey(0)
    kp, kin = jax.random.split(key)
    params, params_torch = init_params(kp)

    B, N, L = 2, 15, MAX_TITLE_LEN          # BN=30 -> tile=16, grid=2 (parallel)
    k1, k2, k3 = jax.random.split(kin, 3)
    title_text = jax.random.randint(k1, (B, N, L), 0, VOCAB_SIZE, dtype=jnp.int32)
    category = jax.random.randint(k2, (B, N), 0, CATEGORY_NUM, dtype=jnp.int32)
    subCategory = jax.random.randint(k3, (B, N), 0, SUBCATEGORY_NUM, dtype=jnp.int32)

    d0, dL = jax.jit(hdc_forward)(params, title_text, category, subCategory)
    d0 = jax.block_until_ready(d0)
    dL = jax.block_until_ready(dL)

    assert d0.shape == (B, N, WORD_EMB_DIM, SEQ_LEN)
    assert dL.shape == (B, N, 3, HDC_FILTER_NUM, SEQ_LEN)

    # Cross-check against a pure-JAX reference of the torch semantics (with the
    # same bf16 matmul-input quantization the kernel uses; accumulation f32).
    dL_ref = hdc_reference(params_torch, d0.reshape(B * N, WORD_EMB_DIM, SEQ_LEN))
    dL_ref = dL_ref.reshape(B, N, 3, HDC_FILTER_NUM, SEQ_LEN)
    max_diff = float(jnp.max(jnp.abs(dL - dL_ref)))
    assert jnp.allclose(dL, dL_ref, rtol=5e-3, atol=5e-3), (
        "mismatch vs reference, max abs diff = %e" % max_diff)

    print("KERNEL_OK")
</pallas_src>

<mosaic_0001>
module attributes {stable_mosaic.version = 11 : i64} {
  func.func @hdc_kernel(%arg0: i32, %arg1: memref<16x256xbf16, #tpu.memory_space<vmem>>, %arg2: memref<256x128xbf16, #tpu.memory_space<vmem>>, %arg3: memref<128x128xbf16, #tpu.memory_space<vmem>>, %arg4: memref<128x128xbf16, #tpu.memory_space<vmem>>, %arg5: memref<9x128xf32, #tpu.memory_space<vmem>>, %arg6: memref<16x384xf32, #tpu.memory_space<vmem>>) attributes {dimension_semantics = [#tpu.dimension_semantics<parallel>], iteration_bounds = array<i64: 2>, scalar_prefetch = 0 : i64, scratch_operands = 0 : i64, tpu.core_type = #tpu.core_type<tc>, window_params = [{transform_indices = @transform_0, window_bounds = array<i64: 16, 256>}, {pipeline_mode = #tpu.pipeline_mode<synchronous>, transform_indices = @transform_1, window_bounds = array<i64: 256, 128>}, {pipeline_mode = #tpu.pipeline_mode<synchronous>, transform_indices = @transform_2, window_bounds = array<i64: 128, 128>}, {pipeline_mode = #tpu.pipeline_mode<synchronous>, transform_indices = @transform_3, window_bounds = array<i64: 128, 128>}, {pipeline_mode = #tpu.pipeline_mode<synchronous>, transform_indices = @transform_4, window_bounds = array<i64: 9, 128>}, {transform_indices = @transform_5, window_bounds = array<i64: 16, 384>}]} {
    %c0 = arith.constant 0 : index
    %c0_0 = arith.constant 0 : index
    %0 = vector.load %arg1[%c0, %c0_0] : memref<16x256xbf16, #tpu.memory_space<vmem>>, vector<16x256xbf16>
    %c0_1 = arith.constant 0 : index
    %c0_2 = arith.constant 0 : index
    %1 = vector.load %arg2[%c0_1, %c0_2] : memref<256x128xbf16, #tpu.memory_space<vmem>>, vector<256x128xbf16>
    %cst = arith.constant dense<0.000000e+00> : vector<16x128xf32>
    %2 = tpu.matmul %0, %1, %cst {dimension_numbers = #tpu.dot_dimension_numbers<[1], [0], [0], [1], [0, 0, 1, 1], [], []>} : vector<16x256xbf16>, vector<256x128xbf16>, vector<16x128xf32> -> vector<16x128xf32>
    %c0_3 = arith.constant 0 : index
    %c0_4 = arith.constant 0 : index
    %3 = vector.load %arg5[%c0_3, %c0_4] : memref<9x128xf32, #tpu.memory_space<vmem>>, vector<1x128xf32>
    %4 = vector.broadcast %3 : vector<1x128xf32> to vector<16x128xf32>
    %5 = arith.addf %2, %4 : vector<16x128xf32>
    %cst_5 = arith.constant dense<0.000000e+00> : vector<16xf32>
    %6 = vector.multi_reduction <add>, %5, %cst_5 [1] : vector<16x128xf32> to vector<16xf32>
    %7 = vector.shape_cast %6 : vector<16xf32> to vector<16x1xf32>
    %8 = arith.mulf %5, %5 : vector<16x128xf32>
    %cst_6 = arith.constant dense<0.000000e+00> : vector<16xf32>
    %9 = vector.multi_reduction <add>, %8, %cst_6 [1] : vector<16x128xf32> to vector<16xf32>
    %10 = vector.shape_cast %9 : vector<16xf32> to vector<16x1xf32>
    %cst_7 = arith.constant 7.812500e-03 : f32
    %11 = vector.broadcast %cst_7 : f32 to vector<16x1xf32>
    %12 = arith.mulf %7, %11 : vector<16x1xf32>
    %cst_8 = arith.constant 7.812500e-03 : f32
    %13 = vector.broadcast %cst_8 : f32 to vector<16x1xf32>
    %14 = arith.mulf %10, %13 : vector<16x1xf32>
    %15 = arith.mulf %12, %12 : vector<16x1xf32>
    %16 = arith.subf %14, %15 : vector<16x1xf32>
    %17 = vector.broadcast %12 : vector<16x1xf32> to vector<16x128xf32>
    %18 = arith.subf %5, %17 : vector<16x128xf32>
    %cst_9 = arith.constant 9.99999974E-6 : f32
    %19 = vector.broadcast %cst_9 : f32 to vector<16x1xf32>
    %20 = arith.addf %16, %19 : vector<16x1xf32>
    %21 = math.rsqrt %20 : vector<16x1xf32>
    %22 = vector.broadcast %21 : vector<16x1xf32> to vector<16x128xf32>
    %23 = arith.mulf %18, %22 : vector<16x128xf32>
    %c1 = arith.constant 1 : index
    %c0_10 = arith.constant 0 : index
    %24 = vector.load %arg5[%c1, %c0_10] : memref<9x128xf32, #tpu.memory_space<vmem>>, vector<1x128xf32>
    %25 = vector.broadcast %24 : vector<1x128xf32> to vector<16x128xf32>
    %26 = arith.mulf %23, %25 : vector<16x128xf32>
    %c2 = arith.constant 2 : index
    %c0_11 = arith.constant 0 : index
    %27 = vector.load %arg5[%c2, %c0_11] : memref<9x128xf32, #tpu.memory_space<vmem>>, vector<1x128xf32>
    %28 = vector.broadcast %27 : vector<1x128xf32> to vector<16x128xf32>
    %29 = arith.addf %26, %28 : vector<16x128xf32>
    %cst_12 = arith.constant 0.000000e+00 : f32
    %30 = vector.broadcast %cst_12 : f32 to vector<16x128xf32>
    %31 = arith.maximumf %29, %30 : vector<16x128xf32>
    %32 = arith.truncf %31 : vector<16x128xf32> to vector<16x128xbf16>
    %c0_13 = arith.constant 0 : index
    %c0_14 = arith.constant 0 : index
    %33 = vector.load %arg3[%c0_13, %c0_14] : memref<128x128xbf16, #tpu.memory_space<vmem>>, vector<128x128xbf16>
    %cst_15 = arith.constant dense<0.000000e+00> : vector<16x128xf32>
    %34 = tpu.matmul %32, %33, %cst_15 {dimension_numbers = #tpu.dot_dimension_numbers<[1], [0], [0], [1], [0, 0, 1, 1], [], []>} : vector<16x128xbf16>, vector<128x128xbf16>, vector<16x128xf32> -> vector<16x128xf32>
    %c3 = arith.constant 3 : index
    %c0_16 = arith.constant 0 : index
    %35 = vector.load %arg5[%c3, %c0_16] : memref<9x128xf32, #tpu.memory_space<vmem>>, vector<1x128xf32>
    %36 = vector.broadcast %35 : vector<1x128xf32> to vector<16x128xf32>
    %37 = arith.addf %34, %36 : vector<16x128xf32>
    %cst_17 = arith.constant dense<0.000000e+00> : vector<16xf32>
    %38 = vector.multi_reduction <add>, %37, %cst_17 [1] : vector<16x128xf32> to vector<16xf32>
    %39 = vector.shape_cast %38 : vector<16xf32> to vector<16x1xf32>
    %40 = arith.mulf %37, %37 : vector<16x128xf32>
    %cst_18 = arith.constant dense<0.000000e+00> : vector<16xf32>
    %41 = vector.multi_reduction <add>, %40, %cst_18 [1] : vector<16x128xf32> to vector<16xf32>
    %42 = vector.shape_cast %41 : vector<16xf32> to vector<16x1xf32>
    %cst_19 = arith.constant 7.812500e-03 : f32
    %43 = vector.broadcast %cst_19 : f32 to vector<16x1xf32>
    %44 = arith.mulf %39, %43 : vector<16x1xf32>
    %cst_20 = arith.constant 7.812500e-03 : f32
    %45 = vector.broadcast %cst_20 : f32 to vector<16x1xf32>
    %46 = arith.mulf %42, %45 : vector<16x1xf32>
    %47 = arith.mulf %44, %44 : vector<16x1xf32>
    %48 = arith.subf %46, %47 : vector<16x1xf32>
    %49 = vector.broadcast %44 : vector<16x1xf32> to vector<16x128xf32>
    %50 = arith.subf %37, %49 : vector<16x128xf32>
    %cst_21 = arith.constant 9.99999974E-6 : f32
    %51 = vector.broadcast %cst_21 : f32 to vector<16x1xf32>
    %52 = arith.addf %48, %51 : vector<16x1xf32>
    %53 = math.rsqrt %52 : vector<16x1xf32>
    %54 = vector.broadcast %53 : vector<16x1xf32> to vector<16x128xf32>
    %55 = arith.mulf %50, %54 : vector<16x128xf32>
    %c4 = arith.constant 4 : index
    %c0_22 = arith.constant 0 : index
    %56 = vector.load %arg5[%c4, %c0_22] : memref<9x128xf32, #tpu.memory_space<vmem>>, vector<1x128xf32>
    %57 = vector.broadcast %56 : vector<1x128xf32> to vector<16x128xf32>
    %58 = arith.mulf %55, %57 : vector<16x128xf32>
    %c5 = arith.constant 5 : index
    %c0_23 = arith.constant 0 : index
    %59 = vector.load %arg5[%c5, %c0_23] : memref<9x128xf32, #tpu.memory_space<vmem>>, vector<1x128xf32>
    %60 = vector.broadcast %59 : vector<1x128xf32> to vector<16x128xf32>
    %61 = arith.addf %58, %60 : vector<16x128xf32>
    %cst_24 = arith.constant 0.000000e+00 : f32
    %62 = vector.broadcast %cst_24 : f32 to vector<16x128xf32>
    %63 = arith.maximumf %61, %62 : vector<16x128xf32>
    %64 = arith.truncf %63 : vector<16x128xf32> to vector<16x128xbf16>
    %c0_25 = arith.constant 0 : index
    %c0_26 = arith.constant 0 : index
    %65 = vector.load %arg4[%c0_25, %c0_26] : memref<128x128xbf16, #tpu.memory_space<vmem>>, vector<128x128xbf16>
    %cst_27 = arith.constant dense<0.000000e+00> : vector<16x128xf32>
    %66 = tpu.matmul %64, %65, %cst_27 {dimension_numbers = #tpu.dot_dimension_numbers<[1], [0], [0], [1], [0, 0, 1, 1], [], []>} : vector<16x128xbf16>, vector<128x128xbf16>, vector<16x128xf32> -> vector<16x128xf32>
    %c6 = arith.constant 6 : index
    %c0_28 = arith.constant 0 : index
    %67 = vector.load %arg5[%c6, %c0_28] : memref<9x128xf32, #tpu.memory_space<vmem>>, vector<1x128xf32>
    %68 = vector.broadcast %67 : vector<1x128xf32> to vector<16x128xf32>
    %69 = arith.addf %66, %68 : vector<16x128xf32>
    %cst_29 = arith.constant dense<0.000000e+00> : vector<16xf32>
    %70 = vector.multi_reduction <add>, %69, %cst_29 [1] : vector<16x128xf32> to vector<16xf32>
    %71 = vector.shape_cast %70 : vector<16xf32> to vector<16x1xf32>
    %72 = arith.mulf %69, %69 : vector<16x128xf32>
    %cst_30 = arith.constant dense<0.000000e+00> : vector<16xf32>
    %73 = vector.multi_reduction <add>, %72, %cst_30 [1] : vector<16x128xf32> to vector<16xf32>
    %74 = vector.shape_cast %73 : vector<16xf32> to vector<16x1xf32>
    %cst_31 = arith.constant 7.812500e-03 : f32
    %75 = vector.broadcast %cst_31 : f32 to vector<16x1xf32>
    %76 = arith.mulf %71, %75 : vector<16x1xf32>
    %cst_32 = arith.constant 7.812500e-03 : f32
    %77 = vector.broadcast %cst_32 : f32 to vector<16x1xf32>
    %78 = arith.mulf %74, %77 : vector<16x1xf32>
    %79 = arith.mulf %76, %76 : vector<16x1xf32>
    %80 = arith.subf %78, %79 : vector<16x1xf32>
    %81 = vector.broadcast %76 : vector<16x1xf32> to vector<16x128xf32>
    %82 = arith.subf %69, %81 : vector<16x128xf32>
    %cst_33 = arith.constant 9.99999974E-6 : f32
    %83 = vector.broadcast %cst_33 : f32 to vector<16x1xf32>
    %84 = arith.addf %80, %83 : vector<16x1xf32>
    %85 = math.rsqrt %84 : vector<16x1xf32>
    %86 = vector.broadcast %85 : vector<16x1xf32> to vector<16x128xf32>
    %87 = arith.mulf %82, %86 : vector<16x128xf32>
    %c7 = arith.constant 7 : index
    %c0_34 = arith.constant 0 : index
    %88 = vector.load %arg5[%c7, %c0_34] : memref<9x128xf32, #tpu.memory_space<vmem>>, vector<1x128xf32>
    %89 = vector.broadcast %88 : vector<1x128xf32> to vector<16x128xf32>
    %90 = arith.mulf %87, %89 : vector<16x128xf32>
    %c8 = arith.constant 8 : index
    %c0_35 = arith.constant 0 : index
    %91 = vector.load %arg5[%c8, %c0_35] : memref<9x128xf32, #tpu.memory_space<vmem>>, vector<1x128xf32>
    %92 = vector.broadcast %91 : vector<1x128xf32> to vector<16x128xf32>
    %93 = arith.addf %90, %92 : vector<16x128xf32>
    %cst_36 = arith.constant 0.000000e+00 : f32
    %94 = vector.broadcast %cst_36 : f32 to vector<16x128xf32>
    %95 = arith.maximumf %93, %94 : vector<16x128xf32>
    %c0_37 = arith.constant 0 : index
    %c0_38 = arith.constant 0 : index
    %96 = vector.load %arg6[%c0_37, %c0_38] : memref<16x384xf32, #tpu.memory_space<vmem>>, vector<16x128xf32>
    tpu.vector_store %arg6[%c0_37, %c0_38], %31 {strides = array<i32>} : memref<16x384xf32, #tpu.memory_space<vmem>>, vector<16x128xf32>,
    %c0_39 = arith.constant 0 : index
    %c128 = arith.constant 128 : index
    %97 = vector.load %arg6[%c0_39, %c128] : memref<16x384xf32, #tpu.memory_space<vmem>>, vector<16x128xf32>
    tpu.vector_store %arg6[%c0_39, %c128], %63 {strides = array<i32>} : memref<16x384xf32, #tpu.memory_space<vmem>>, vector<16x128xf32>,
    %c0_40 = arith.constant 0 : index
    %c256 = arith.constant 256 : index
    %98 = vector.load %arg6[%c0_40, %c256] : memref<16x384xf32, #tpu.memory_space<vmem>>, vector<16x128xf32>
    tpu.vector_store %arg6[%c0_40, %c256], %95 {strides = array<i32>} : memref<16x384xf32, #tpu.memory_space<vmem>>, vector<16x128xf32>,
    return
  }
  func.func @transform_0(%arg0: i32) -> (i32, i32) {
    %c0_i32 = arith.constant 0 : i32
    %c0_i32_0 = arith.constant 0 : i32
    return %arg0, %c0_i32 : i32, i32
  }
  func.func @transform_1(%arg0: i32) -> (i32, i32) {
    %c0_i32 = arith.constant 0 : i32
    %c0_i32_0 = arith.constant 0 : i32
    %c0_i32_1 = arith.constant 0 : i32
    return %c0_i32, %c0_i32_0 : i32, i32
  }
  func.func @transform_2(%arg0: i32) -> (i32, i32) {
    %c0_i32 = arith.constant 0 : i32
    %c0_i32_0 = arith.constant 0 : i32
    %c0_i32_1 = arith.constant 0 : i32
    return %c0_i32, %c0_i32_0 : i32, i32
  }
  func.func @transform_3(%arg0: i32) -> (i32, i32) {
    %c0_i32 = arith.constant 0 : i32
    %c0_i32_0 = arith.constant 0 : i32
    %c0_i32_1 = arith.constant 0 : i32
    return %c0_i32, %c0_i32_0 : i32, i32
  }
  func.func @transform_4(%arg0: i32) -> (i32, i32) {
    %c0_i32 = arith.constant 0 : i32
    %c0_i32_0 = arith.constant 0 : i32
    %c0_i32_1 = arith.constant 0 : i32
    return %c0_i32, %c0_i32_0 : i32, i32
  }
  func.func @transform_5(%arg0: i32) -> (i32, i32) {
    %c0_i32 = arith.constant 0 : i32
    %c0_i32_0 = arith.constant 0 : i32
    return %arg0, %c0_i32 : i32, i32
  }
}

</mosaic_0001>

<bundles_post_ra>
// kernel: hdc_forward.1
= control target key start
LH: loop header
LB: loop body
LE: loop exit
PB: predicated region body
PF: predicated region fallthrough
CT: control target
= control target key end

     0   :  { %s1042_s18 = smov 0   ;;  %s1206_s0 = inlined_call_operand.vmem [shape: bf16[32,256], index: 0, kind: input, shape index: {}]   ;;  %s1207_s1 = inlined_call_operand.vmem [shape: bf16[256,128], index: 1, kind: input, shape index: {}]   ;;  %s1208_s2 = inlined_call_operand.vmem [shape: bf16[128,128], index: 2, kind: input, shape index: {}]   ;;  %s1209_s3 = inlined_call_operand.vmem [shape: bf16[128,128], index: 3, kind: input, shape index: {}]   ;;  %s1210_s4 = inlined_call_operand.vmem [shape: f32[9,128], index: 4, kind: input, shape index: {}]   ;;  %s1211_s5 = inlined_call_operand.vmem [shape: f32[32,384], index: 5, kind: output, shape index: {}]  }
   0x1 LB: > { %s791_s19 = sadd.s32 4294967295, %s1010_s18   ;;  %p795_p0 = scmp.ge.s32.totalorder %s1010_s18, 1  ;;  %s1010_s18 = sphi %s1042_s18, %s15_s18  }
   0x2   : > { %p189_p1 = scmp.lt.s32.totalorder %s1010_s18, 3 }
   0x4   : > { %p190_p2 = pnand %p795_p0, %p189_p1 }
   0x5   : > { %s796_s7 = sshll.u32 (!%p190_p2), %s791_s19, 1 }
   0x6   : > { %193 = sbr.rel (%p190_p2) target bundleno = 920 (0x398), region = 40  ;;  %p220_p3 = scmp.lt.s32.totalorder (!%p190_p2), %s796_s7, 3 }
   0xb   : > { %v949_v0 = vld [vmem:[%s1207_s1 + $0x38] sm:$0xff]  ;;  %v948_v2 = vld [vmem:[%s1207_s1 + $0x30] sm:$0xff]  ;;  %v947_v4 = vld [vmem:[%s1207_s1 + $0x28] sm:$0xff]  ;;  %s1213_s7 = smov (!%p220_p3, %s796_s7), 3 }
   0xc   : > { %v957_v1 = vld [vmem:[%s1207_s1 + $0x78] sm:$0xff]  ;;  %375 = vmatpush.bf16.msra.mxu0 %v949_v0  ;;  %v956_v3 = vld [vmem:[%s1207_s1 + $0x70] sm:$0xff]  ;;  %v955_v5 = vld [vmem:[%s1207_s1 + $0x68] sm:$0xff]  ;;  %s939_s21 = sshll.u32 %s1213_s7, 3  ;;  %s974_s8 = smul.u32 24, %s1213_s7 }
   0xd   : > { %389 = vmatpush.bf16.msra.mxu1 %v957_v1  ;;  %v946_v6 = vld [vmem:[%s1207_s1 + $0x20] sm:$0xff]  ;;  %v945_v8 = vld [vmem:[%s1207_s1 + $0x18] sm:$0xff]  ;;  %v944_v10 = vld [vmem:[%s1207_s1 + $0x10] sm:$0xff]  ;;  %s224_s28 = scalar_lea.vmem %s1206_s0, %s939_s21 }
   0xe   : > { %v954_v7 = vld [vmem:[%s1207_s1 + $0x60] sm:$0xff]  ;;  %v953_v9 = vld [vmem:[%s1207_s1 + $0x58] sm:$0xff]  ;;  %v952_v11 = vld [vmem:[%s1207_s1 + $0x50] sm:$0xff]  ;;  %s1146_s11 = scalar_lea.vmem %s1211_s5, %s974_s8 }
   0xf   : > { %v943_v12 = vld [vmem:[%s1207_s1 + $0x8] sm:$0xff]  ;;  %v942_v14 = vld [vmem:[%s1207_s1] sm:$0xff]  ;;  %v965_v33 = vld [vmem:[%s1208_s2 + $0x38] sm:$0xff] }
  0x10   : > { %376 = vmatpush.bf16.msra.mxu0 %v948_v2  ;;  %v951_v13 = vld [vmem:[%s1207_s1 + $0x48] sm:$0xff]  ;;  %v950_v15 = vld [vmem:[%s1207_s1 + $0x40] sm:$0xff]  ;;  %524 = vmatpush.bf16.msra.mxu2 %v965_v33  ;;  %v964_v34 = vld [vmem:[%s1208_s2 + $0x30] sm:$0xff] }
  0x11   : > { %390 = vmatpush.bf16.msra.mxu1 %v956_v3  ;;  %v803_v16 = vld [vmem:[%s224_s28] sm:$0xf]  ;;  %v941_v17 = vld [vmem:[%s224_s28 + $0x4] sm:$0xf0]  ;;  %v940_v18 = vld [vmem:[%s224_s28 + $0x4] sm:$0xf] }
  0x12   : > { %v805_v19 = vld [vmem:[%s224_s28 + $0x8] sm:$0xf0]  ;;  %v804_v20 = vor.u32 %v941_v17, %v803_v16  ;;  %v983_v22 = vld [vmem:[%s1210_s4] ss:$0 sm:$0xff]  ;;  %v961_v37 = vld [vmem:[%s1208_s2 + $0x18] sm:$0xff] }
  0x13   : > { %v808_v21 = vor.u32 %v940_v18, %v805_v19  ;;  %v963_v35 = vld [vmem:[%s1208_s2 + $0x28] sm:$0xff]  ;;  %v962_v36 = vld [vmem:[%s1208_s2 + $0x20] sm:$0xff]  ;;  %v960_v39 = vld [vmem:[%s1208_s2 + $0x10] sm:$0xff] }
  0x14   : > { %377 = vmatpush.bf16.msra.mxu0 %v947_v4  ;;  %525 = vmatpush.bf16.msra.mxu2 %v964_v34  ;;  %v959_v42 = vld [vmem:[%s1208_s2 + $0x8] sm:$0xff]  ;;  %v958_v46 = vld [vmem:[%s1208_s2] sm:$0xff] }
  0x15   : > { %391 = vmatpush.bf16.msra.mxu1 %v955_v5  ;;  %v984_v0 = vld [vmem:[%s1210_s4 + $0x1] ss:$0 sm:$0xff]  ;;  %v985_v4 = vld [vmem:[%s1210_s4 + $0x2] ss:$0 sm:$0xff]  ;;  %v986_v18 = vld [vmem:[%s1210_s4 + $0x3] ss:$0 sm:$0xff] }
  0x16   : > { %v967_v34 = vld [vmem:[%s1209_s3 + $0x8] sm:$0xff] }
  0x18   : > { %378 = vmatpush.bf16.msra.mxu0 %v946_v6  ;;  %526 = vmatpush.bf16.msra.mxu2 %v963_v35 }
  0x19   : > { %392 = vmatpush.bf16.msra.mxu1 %v954_v7 }
  0x1c   : > { %379 = vmatpush.bf16.msra.mxu0 %v945_v8  ;;  %527 = vmatpush.bf16.msra.mxu2 %v962_v36 }
  0x1d   : > { %393 = vmatpush.bf16.msra.mxu1 %v953_v9 }
  0x20   : > { %380 = vmatpush.bf16.msra.mxu0 %v944_v10  ;;  %528 = vmatpush.bf16.msra.mxu2 %v961_v37 }
  0x21   : > { %394 = vmatpush.bf16.msra.mxu1 %v952_v11 }
  0x24   : > { %381 = vmatpush.bf16.msra.mxu0 %v943_v12  ;;  %529 = vmatpush.bf16.msra.mxu2 %v960_v39 }
  0x25   : > { %395 = vmatpush.bf16.msra.mxu1 %v951_v13 }
  0x28   : > { %382 = vmatpush.bf16.msra.mxu0 %v942_v14  ;;  %530 = vmatpush.bf16.msra.mxu2 %v959_v42 }
  0x29   : > { %396 = vmatpush.bf16.msra.mxu1 %v950_v15 }
  0x2b   : > { %383 = vmatmul.bf16.vlgmr.msra.gmra.mxu0 %v804_v20 }
  0x2c   : > { %397 = vmatmul.bf16.vlgmr.msra.gmra.mxu1 %v808_v21  ;;  %531 = vmatpush.bf16.msra.mxu2 %v958_v46 }
  0xa8   : > { %v384_v23 = vpop.f32.mrf.mxu0 }
  0xa9   : > { %v398_v24 = vpop.f32.mrf.mxu1  ;;  %v385_v25 = vadd.f32 %v983_v22, %v384_v23 }
  0xab   : > { %v399_v26 = vadd.f32 %v398_v24, %v385_v25  ;;  %v973_v25 = vld [vmem:[%s1209_s3 + $0x38] sm:$0xff] }
  0xac   : > { %659 = vmatpush.bf16.msra.mxu3 %v973_v25 }
  0xad   : > { %403 = vadd.xlane.f32.xlu0 %v399_v26  ;;  %v407_v27 = vmul.f32 %v399_v26, %v399_v26 }
  0xaf   : > { %409 = vadd.xlane.f32.xlu1 %v407_v27  ;;  %v971_v27 = vld [vmem:[%s1209_s3 + $0x28] sm:$0xff] }
  0xb0   : > { %v386_v28 = vpop.f32.mrf.mxu0 }
  0xb1   : > { %v387_v29 = vadd.f32 %v983_v22, %v386_v28  ;;  %v400_v30 = vpop.f32.mrf.mxu1  ;;  %v970_v28 = vld [vmem:[%s1209_s3 + $0x20] sm:$0xff] }
  0xb3   : > { %v1107_v31 = vadd.f32 %v400_v30, %v387_v29  ;;  %v969_v29 = vld [vmem:[%s1209_s3 + $0x18] sm:$0xff] }
  0xb5   : > { %405 = vadd.xlane.f32.xlu0 %v1107_v31  ;;  %v408_v32 = vmul.f32 %v1107_v31, %v1107_v31 }
  0xb7   : > { %411 = vadd.xlane.f32.xlu1 %v408_v32 }
 0x120   : > { %v404_v38 = vpop.xlane.xlu0 %403 }
 0x121   : > { %v413_v40 = vmul.f32 0.0078125, %v404_v38  ;;  %v966_v38 = vld [vmem:[%s1209_s3] sm:$0xff] }
 0x122   : > { %v410_v41 = vpop.xlane.xlu1 %409 }
 0x123   : > { %v417_v43 = vmul.f32 %v413_v40, %v413_v40  ;;  %v415_v44 = vmul.f32 0.0078125, %v410_v41  ;;  %v421_v63 = vsub.f32 %v399_v26, %v413_v40  ;;  %v972_v26 = vld [vmem:[%s1209_s3 + $0x30] sm:$0xff] }
 0x124   : > { %660 = vmatpush.bf16.msra.mxu3 %v972_v26 }
 0x125   : > { %v419_v45 = vsub.f32 %v415_v44, %v417_v43 }
 0x127   : > { %v423_v47 = vadd.f32 1e-05, %v419_v45 }
 0x128   : > { %v406_v48 = vpop.xlane.xlu0 %405  ;;  %661 = vmatpush.bf16.msra.mxu3 %v971_v27 }
 0x129   : > { %992 = vrsqrt.f32 %v423_v47  ;;  %v414_v49 = vmul.f32 0.0078125, %v406_v48  ;;  %vm431_vm1 = vweird.f32 %v423_v47 }
 0x12a   : > { %v412_v50 = vpop.xlane.xlu1 %411 }
 0x12b   : > { %v418_v51 = vmul.f32 %v414_v49, %v414_v49  ;;  %v416_v52 = vmul.f32 0.0078125, %v412_v50  ;;  %v422_v10 = vsub.f32 %v1107_v31, %v414_v49  ;;  %v968_v31 = vld [vmem:[%s1209_s3 + $0x10] sm:$0xff] }
 0x12c   : > { %662 = vmatpush.bf16.msra.mxu3 %v970_v28 }
 0x12d   : > { %v420_v53 = vsub.f32 %v416_v52, %v418_v51 }
 0x12f   : > { %v993_v54 = vpop.eup %992  ;;  %v424_v55 = vadd.f32 1e-05, %v420_v53 }
 0x130   : > { %v426_v56 = vmul.f32 %v993_v54, %v423_v47  ;;  %vm432_vm0 = vweird.f32 %v993_v54  ;;  %663 = vmatpush.bf16.msra.mxu3 %v969_v29 }
 0x131   : > { %994 = vrsqrt.f32 %v424_v55  ;;  %vm433_vm2 = vmor %vm431_vm1, %vm432_vm0  ;;  %vm441_vm4 = vweird.f32 %v424_v55 }
 0x132   : > { %v427_v57 = vmul.f32 %v993_v54, %v426_v56  ;;  %v987_v56 = vld [vmem:[%s1210_s4 + $0x4] ss:$0 sm:$0xff] }
 0x134   : > { %v428_v58 = vmul.f32 0.5, %v427_v57  ;;  %664 = vmatpush.bf16.msra.mxu3 %v968_v31 }
 0x136   : > { %v429_v59 = vsub.f32 1.5, %v428_v58 }
 0x137   : > { %v995_v60 = vpop.eup %994 }
 0x138   : > { %v430_v61 = vmul.f32 %v993_v54, %v429_v59  ;;  %v436_v62 = vmul.f32 %v995_v60, %v424_v55  ;;  %vm442_vm3 = vweird.f32 %v995_v60  ;;  %665 = vmatpush.bf16.msra.mxu3 %v967_v34 }
 0x139   : > { %vm443_vm5 = vmor %vm441_vm4, %vm442_vm3 }
 0x13a   : > { %v437_v1 = vmul.f32 %v995_v60, %v436_v62  ;;  %v434_v2 = vsel %vm433_vm2, %v993_v54, %v430_v61 }
 0x13b   : > { %v445_v3 = vmul.f32 %v434_v2, %v421_v63 }
 0x13c   : > { %v438_v5 = vmul.f32 0.5, %v437_v1  ;;  %666 = vmatpush.bf16.msra.mxu3 %v966_v38 }
 0x13d   : > { %v449_v6 = vmul.f32 %v984_v0, %v445_v3 }
 0x13e   : > { %v439_v7 = vsub.f32 1.5, %v438_v5 }
 0x13f   : > { %v453_v8 = vadd.f32 %v985_v4, %v449_v6 }
 0x140   : > { %v440_v9 = vmul.f32 %v995_v60, %v439_v7 }
 0x141   : > { %v455_v11 = vmax.f32 %v453_v8, 0.0 }
 0x142   : > { %v444_v12 = vsel %vm443_vm5, %v995_v60, %v440_v9  ;;  %v988_v60 = vld [vmem:[%s1210_s4 + $0x5] ss:$0 sm:$0xff] }
 0x143   : > { %v446_v13 = vmul.f32 %v444_v12, %v422_v10  ;;  %727 = vst [vmem:[%s1146_s11] sm:$0xff] %v455_v11  ;;  %v989_v10 = vld [vmem:[%s1210_s4 + $0x6] ss:$0 sm:$0xff] }
 0x145   : > { %v450_v14 = vmul.f32 %v984_v0, %v446_v13 }
 0x147   : > { %v454_v15 = vadd.f32 %v985_v4, %v450_v14 }
 0x149   : > { %v456_v16 = vmax.f32 %v454_v15, 0.0 }
 0x14b   : > { %v457_v17 = vpack.c.bf16 %v456_v16, %v455_v11  ;;  %728 = vst [vmem:[%s1146_s11 + $0x18] sm:$0xff] %v456_v16 }
 0x14d   : > { %532 = vmatmul.bf16.vlgmr.msra.gmra.mxu2 %v457_v17 }
 0x1d0   : > { %v533_v19 = vpop.f32.mrf.mxu2 }
 0x1d1   : > { %v534_v20 = vadd.f32 %v986_v18, %v533_v19 }
 0x1d3   : > { %538 = vadd.xlane.f32.xlu2 %v534_v20  ;;  %v542_v21 = vmul.f32 %v534_v20, %v534_v20 }
 0x1d5   : > { %544 = vadd.xlane.f32.xlu0 %v542_v21 }
 0x1d8   : > { %v535_v22 = vpop.f32.mrf.mxu2 }
 0x1d9   : > { %v1154_v23 = vadd.f32 %v986_v18, %v535_v22 }
 0x1db   : > { %540 = vadd.xlane.f32.xlu2 %v1154_v23  ;;  %v543_v24 = vmul.f32 %v1154_v23, %v1154_v23 }
 0x1dd   : > { %546 = vadd.xlane.f32.xlu1 %v543_v24 }
 0x246   : > { %v539_v30 = vpop.xlane.xlu2 %538 }
 0x247   : > { %v548_v32 = vmul.f32 0.0078125, %v539_v30 }
 0x248   : > { %v545_v33 = vpop.xlane.xlu0 %544 }
 0x249   : > { %v552_v35 = vmul.f32 %v548_v32, %v548_v32  ;;  %v550_v36 = vmul.f32 0.0078125, %v545_v33  ;;  %v556_v55 = vsub.f32 %v534_v20, %v548_v32 }
 0x24b   : > { %v554_v37 = vsub.f32 %v550_v36, %v552_v35 }
 0x24d   : > { %v558_v39 = vadd.f32 1e-05, %v554_v37 }
 0x24e   : > { %v541_v40 = vpop.xlane.xlu2 %540 }
 0x24f   : > { %996 = vrsqrt.f32 %v558_v39  ;;  %v549_v41 = vmul.f32 0.0078125, %v541_v40  ;;  %vm566_vm7 = vweird.f32 %v558_v39  ;;  %v990_v40 = vld [vmem:[%s1210_s4 + $0x7] ss:$0 sm:$0xff] }
 0x250   : > { %v547_v42 = vpop.xlane.xlu1 %546 }
 0x251   : > { %v553_v43 = vmul.f32 %v549_v41, %v549_v41  ;;  %v551_v44 = vmul.f32 0.0078125, %v547_v42  ;;  %v557_v2 = vsub.f32 %v1154_v23, %v549_v41 }
 0x253   : > { %v555_v45 = vsub.f32 %v551_v44, %v553_v43  ;;  %v991_v43 = vld [vmem:[%s1210_s4 + $0x8] ss:$0 sm:$0xff] }
 0x255   : > { %v997_v46 = vpop.eup %996  ;;  %v559_v47 = vadd.f32 1e-05, %v555_v45 }
 0x256   : > { %v561_v48 = vmul.f32 %v997_v46, %v558_v39  ;;  %vm567_vm6 = vweird.f32 %v997_v46 }
 0x257   : > { %998 = vrsqrt.f32 %v559_v47  ;;  %vm568_vm8 = vmor %vm566_vm7, %vm567_vm6  ;;  %vm576_vm10 = vweird.f32 %v559_v47 }
 0x258   : > { %v562_v49 = vmul.f32 %v997_v46, %v561_v48 }
 0x25a   : > { %v563_v50 = vmul.f32 0.5, %v562_v49 }
 0x25c   : > { %v564_v51 = vsub.f32 1.5, %v563_v50 }
 0x25d   : > { %v999_v52 = vpop.eup %998 }
 0x25e   : > { %v565_v53 = vmul.f32 %v997_v46, %v564_v51  ;;  %v571_v54 = vmul.f32 %v999_v52, %v559_v47  ;;  %vm577_vm9 = vweird.f32 %v999_v52 }
 0x25f   : > { %vm578_vm11 = vmor %vm576_vm10, %vm577_vm9 }
 0x260   : > { %v572_v57 = vmul.f32 %v999_v52, %v571_v54  ;;  %v569_v58 = vsel %vm568_vm8, %v997_v46, %v565_v53 }
 0x261   : > { %v580_v59 = vmul.f32 %v569_v58, %v556_v55 }
 0x262   : > { %v573_v61 = vmul.f32 0.5, %v572_v57 }
 0x263   : > { %v584_v62 = vmul.f32 %v987_v56, %v580_v59 }
 0x264   : > { %v574_v63 = vsub.f32 1.5, %v573_v61 }
 0x265   : > { %v588_v0 = vadd.f32 %v988_v60, %v584_v62 }
 0x266   : > { %v575_v1 = vmul.f32 %v999_v52, %v574_v63 }
 0x267   : > { %v590_v3 = vmax.f32 %v588_v0, 0.0 }
 0x268   : > { %v579_v4 = vsel %vm578_vm11, %v999_v52, %v575_v1 }
 0x269   : > { %v581_v5 = vmul.f32 %v579_v4, %v557_v2  ;;  %729 = vst [vmem:[%s1146_s11 + $0x8] sm:$0xff] %v590_v3 }
 0x26b   : > { %v585_v6 = vmul.f32 %v987_v56, %v581_v5 }
 0x26d   : > { %v589_v7 = vadd.f32 %v988_v60, %v585_v6 }
 0x26f   : > { %v591_v8 = vmax.f32 %v589_v7, 0.0 }
 0x271   : > { %v592_v9 = vpack.c.bf16 %v591_v8, %v590_v3  ;;  %730 = vst [vmem:[%s1146_s11 + $0x20] sm:$0xff] %v591_v8 }
 0x273   : > { %667 = vmatmul.bf16.vlgmr.msra.gmra.mxu3 %v592_v9 }
 0x2f6   : > { %v668_v11 = vpop.f32.mrf.mxu3 }
 0x2f7   : > { %v669_v12 = vadd.f32 %v989_v10, %v668_v11 }
 0x2f9   : > { %673 = vadd.xlane.f32.xlu2 %v669_v12  ;;  %v677_v13 = vmul.f32 %v669_v12, %v669_v12 }
 0x2fb   : > { %679 = vadd.xlane.f32.xlu1 %v677_v13 }
 0x2fe   : > { %v670_v14 = vpop.f32.mrf.mxu3 }
 0x2ff   : > { %v671_v15 = vadd.f32 %v989_v10, %v670_v14 }
 0x301   : > { %675 = vadd.xlane.f32.xlu0 %v671_v15  ;;  %v678_v16 = vmul.f32 %v671_v15, %v671_v15 }
 0x303   : > { %681 = vadd.xlane.f32.xlu2 %v678_v16 }
 0x36c   : > { %v674_v17 = vpop.xlane.xlu2 %673 }
 0x36d   : > { %v683_v18 = vmul.f32 0.0078125, %v674_v17 }
 0x36e   : > { %v680_v19 = vpop.xlane.xlu1 %679 }
 0x36f   : > { %v687_v20 = vmul.f32 %v683_v18, %v683_v18  ;;  %v685_v21 = vmul.f32 0.0078125, %v680_v19  ;;  %v691_v39 = vsub.f32 %v669_v12, %v683_v18 }
 0x371   : > { %v689_v22 = vsub.f32 %v685_v21, %v687_v20 }
 0x373   : > { %v693_v23 = vadd.f32 1e-05, %v689_v22 }
 0x374   : > { %v676_v24 = vpop.xlane.xlu0 %675 }
 0x375   : > { %1000 = vrsqrt.f32 %v693_v23  ;;  %v684_v25 = vmul.f32 0.0078125, %v676_v24  ;;  %vm701_vm13 = vweird.f32 %v693_v23 }
 0x376   : > { %v682_v26 = vpop.xlane.xlu2 %681 }
 0x377   : > { %v688_v27 = vmul.f32 %v684_v25, %v684_v25  ;;  %v686_v28 = vmul.f32 0.0078125, %v682_v26  ;;  %v692_v51 = vsub.f32 %v671_v15, %v684_v25 }
 0x379   : > { %v690_v29 = vsub.f32 %v686_v28, %v688_v27 }
 0x37b   : > { %v1001_v30 = vpop.eup %1000  ;;  %v694_v31 = vadd.f32 1e-05, %v690_v29 }
 0x37c   : > { %v696_v32 = vmul.f32 %v1001_v30, %v693_v23  ;;  %vm702_vm12 = vweird.f32 %v1001_v30 }
 0x37d   : > { %1002 = vrsqrt.f32 %v694_v31  ;;  %vm703_vm14 = vmor %vm701_vm13, %vm702_vm12  ;;  %vm711_vm0 = vweird.f32 %v694_v31 }
 0x37e   : > { %v697_v33 = vmul.f32 %v1001_v30, %v696_v32 }
 0x380   : > { %v698_v34 = vmul.f32 0.5, %v697_v33 }
 0x382   : > { %v699_v35 = vsub.f32 1.5, %v698_v34 }
 0x383   : > { %v1003_v36 = vpop.eup %1002 }
 0x384   : > { %v700_v37 = vmul.f32 %v1001_v30, %v699_v35  ;;  %v706_v38 = vmul.f32 %v1003_v36, %v694_v31  ;;  %vm712_vm15 = vweird.f32 %v1003_v36 }
 0x385   : > { %vm713_vm1 = vmor %vm711_vm0, %vm712_vm15 }
 0x386   : > { %v704_v41 = vsel %vm703_vm14, %v1001_v30, %v700_v37  ;;  %v707_v42 = vmul.f32 %v1003_v36, %v706_v38 }
 0x387   : > { %v715_v44 = vmul.f32 %v704_v41, %v691_v39 }
 0x388   : > { %v708_v45 = vmul.f32 0.5, %v707_v42 }
 0x389   : > { %v719_v46 = vmul.f32 %v990_v40, %v715_v44 }
 0x38a   : > { %v709_v47 = vsub.f32 1.5, %v708_v45 }
 0x38b   : > { %v723_v48 = vadd.f32 %v991_v43, %v719_v46 }
 0x38c   : > { %v710_v49 = vmul.f32 %v1003_v36, %v709_v47 }
 0x38d   : > { %v725_v50 = vmax.f32 %v723_v48, 0.0 }
 0x38e   : > { %v714_v52 = vsel %vm713_vm1, %v1003_v36, %v710_v49 }
 0x38f   : > { %731 = vst [vmem:[%s1146_s11 + $0x10] sm:$0xff] %v725_v50  ;;  %v716_v53 = vmul.f32 %v714_v52, %v692_v51 }
 0x391   : > { %v720_v54 = vmul.f32 %v990_v40, %v716_v53 }
 0x393   : > { %v724_v55 = vadd.f32 %v991_v43, %v720_v54 }
 0x395   : > { %v726_v56 = vmax.f32 %v724_v55, 0.0 }
 0x397   : > { %732 = vst [vmem:[%s1146_s11 + $0x28] sm:$0xff] %v726_v56 }
 0x398 PF: > { %s15_s18 = sadd.s32 1, %s1010_s18  }
 0x399   : > { %p12_p4 = scmp.ge.s32.totalorder %s15_s18, 4  }
 0x39b   :  { %14 = sbr.rel (!%p12_p4) target bundleno = 1 (0x1), region = 70 }

</bundles_post_ra>
